<compile_context>
chip_gen: v5e
topology: v5e:2x2
jax: 0.10.0
libtpu: 0.0.40
codegen_flags: <defaults>
</compile_context>

<pallas_src>
import functools

import jax
import jax.numpy as jnp
from jax import lax
from jax.experimental import pallas as pl
from jax.experimental.pallas import tpu as pltpu


# --------------------------------------------------------------------------
# method == 'last'
# --------------------------------------------------------------------------
def trans_pooler_last(x):
    # Single (B, H) slice: one XLA DMA. Deliberately NOT a Pallas kernel.
    return x[-1, :, :]


# --------------------------------------------------------------------------
# hardware-aware sizing helpers
# --------------------------------------------------------------------------
def _tpu_caps():
    """Return (vmem_capacity_bytes, num_tensorcores_per_chip), conservative defaults."""
    vmem = 64 * 1024 * 1024   # conservative (v7x per-TC size); v5e/v6e have 128 MiB
    n_tc = 1
    try:
        info = pltpu.get_tpu_info()
        v = getattr(info, "vmem_capacity_bytes", None)
        if v:
            vmem = int(v)
        for attr in ("num_cores", "num_tensorcores", "tensorcore_count",
                     "cores_per_chip"):
            c = getattr(info, attr, None)
            if c:
                n_tc = max(n_tc, int(c))
                break
    except Exception:
        pass
    try:
        kind = jax.devices()[0].device_kind.lower()
        # 2-TC-per-chip generations (megacore / v7x). Perf-only if this misses.
        if ("v7" in kind) or ("v4" in kind) or ("v5p" in kind):
            n_tc = max(n_tc, 2)
    except Exception:
        pass
    return vmem, n_tc


def _budgets(vmem_capacity_bytes):
    """Per-input-buffer byte budget and scoped-VMEM limit, by VMEM generation."""
    if vmem_capacity_bytes >= 96 * 1024 * 1024:
        # v5e / v6e class: 128 MiB physical VMEM.
        return 16 * 1024 * 1024, 64 * 1024 * 1024
    # v7x class: 64 MiB per TensorCore.
    return 10 * 1024 * 1024, 40 * 1024 * 1024


def _choose_seq_tile(S, lanes, dtype, budget_bytes, max_seq_tile=None):
    itemsize = jnp.dtype(dtype).itemsize
    sub = max(8, 32 // itemsize)            # 8 f32 / 16 bf16 / 32 int8-fp8
    ts = budget_bytes // max(1, lanes * itemsize)
    if max_seq_tile is not None:
        ts = min(ts, max_seq_tile)
    ts = max(sub, (ts // sub) * sub)        # dtype-native sublane multiple
    if S <= ts:
        return S                            # single full block (always legal)
    return ts


# --------------------------------------------------------------------------
# method == 'avg'  (HBM-bandwidth-bound reduction over the sequence axis)
# --------------------------------------------------------------------------
def _avg_kernel(x_ref, o_ref, *scratch, seq_len, ts, use_mxu):
    # grid = (n_hidden_chunks [parallel], n_seq_tiles [arbitrary/reduction])
    s = pl.program_id(1)
    n_s = pl.num_programs(1)
    acc = scratch[0] if scratch else o_ref  # f32 accumulator

    @pl.when(s == 0)
    def _():
        acc[...] = jnp.zeros_like(acc)

    def tile_sum(xb):
        # xb: (ts, th) in the input dtype -> (1, th) f32 partial sum.
        if use_mxu:
            # MXU ones-dot: bf16/int8 reduce without a full-tile f32 cast and
            # without a per-step VALU/XLU cross-sublane reduce.
            ones = jnp.ones((1, ts), dtype=xb.dtype)
            return jnp.dot(ones, xb, preferred_element_type=jnp.float32)
        return jnp.sum(xb.astype(jnp.float32), axis=0, keepdims=True)

    rem = seq_len % ts  # static Python int
    if rem == 0:
        acc[...] += tile_sum(x_ref[...])
    else:
        @pl.when(s < n_s - 1)
        def _():
            acc[...] += tile_sum(x_ref[...])

        @pl.when(s == n_s - 1)
        def _():
            # Last block runs past the end of the array: mask padded rows BEFORE
            # any arithmetic so stale VMEM contents never reach the sum.
            row = lax.broadcasted_iota(jnp.int32, (ts, 1), 0)
            xb = jnp.where(row < rem, x_ref[...], jnp.zeros_like(x_ref[...]))
            acc[...] += tile_sum(xb)

    @pl.when(s == n_s - 1)
    def _():
        o_ref[...] = (acc[...] * (1.0 / seq_len)).astype(o_ref.dtype)


def trans_pooler_avg(x, max_seq_tile=None):
    S, B, H = x.shape
    BH = B * H

    # Narrow lane dim: half-empty vregs + masked stores; launch overhead dominates.
    if BH < 128:
        return jnp.mean(x.astype(jnp.float32), axis=0).astype(x.dtype)

    xf = x.reshape(S, BH)       # fold batch into the lane axis (contiguous, free)
    itemsize = jnp.dtype(x.dtype).itemsize

    vmem_cap, n_tc = _tpu_caps()
    budget, vmem_limit = _budgets(vmem_cap)

    # 2-way lane split only when the chip actually has 2 TensorCores and both
    # halves stay 128-lane aligned; single-TC chips keep one full-width chunk.
    if n_tc >= 2 and BH % 256 == 0:
        n_h, th = 2, BH // 2
    else:
        # TODO(synk): on 2-TC chips with BH % 256 != 0, split the seq axis across
        # cores with a small partial-sum combine instead of leaving one TC idle.
        n_h, th = 1, BH

    ts = _choose_seq_tile(S, th, x.dtype, budget, max_seq_tile)
    n_s = pl.cdiv(S, ts)

    is_f32 = x.dtype == jnp.float32
    use_mxu = not is_f32        # route sub-32-bit reductions through the MXU
    # f32 accumulates directly into the resident output block; narrower dtypes
    # use an f32 VMEM scratch and cast once at the end.
    scratch_shapes = [] if is_f32 else [pltpu.VMEM((1, th), jnp.float32)]

    kernel = functools.partial(_avg_kernel, seq_len=S, ts=ts, use_mxu=use_mxu)

    out = pl.pallas_call(
        kernel,
        out_shape=jax.ShapeDtypeStruct((1, BH), x.dtype),
        grid_spec=pltpu.PrefetchScalarGridSpec(
            num_scalar_prefetch=0,
            grid=(n_h, n_s),
            in_specs=[pl.BlockSpec((ts, th), lambda h, s: (s, h))],
            out_specs=pl.BlockSpec((1, th), lambda h, s: (0, h)),
            scratch_shapes=scratch_shapes,
        ),
        compiler_params=pltpu.CompilerParams(
            dimension_semantics=("parallel", "arbitrary"),
            vmem_limit_bytes=vmem_limit,
        ),
        cost_estimate=pl.CostEstimate(
            flops=S * BH,
            transcendentals=0,
            bytes_accessed=S * BH * itemsize + BH * itemsize,
        ),
    )(xf)
    return out.reshape(B, H)


def trans_pooler(x, method="last"):
    if method == "last":
        return trans_pooler_last(x)
    elif method == "avg":
        return trans_pooler_avg(x)
    else:
        raise ValueError(f"unknown method: {method}")


if __name__ == "__main__":
    key = jax.random.PRNGKey(0)

    # --- module-default-like shape: seq=8, batch=2, hidden=32 (BH<128 -> jnp fallback)
    S, B, H = 8, 2, 32
    x = jax.random.normal(key, (S, B, H), dtype=jnp.float32)
    out_last = jax.block_until_ready(trans_pooler(x, method="last"))
    out_avg = jax.block_until_ready(trans_pooler(x, method="avg"))
    assert out_last.shape == (B, H) and out_avg.shape == (B, H)
    assert jnp.allclose(out_last, x[-1, :, :], atol=1e-6)
    assert jnp.allclose(out_avg, jnp.mean(x, axis=0), atol=1e-5)

    # --- f32, multiple seq blocks: resident-output accumulation (Pallas path)
    S1, B1, H1 = 64, 2, 128
    x1 = jax.random.normal(jax.random.PRNGKey(1), (S1, B1, H1), dtype=jnp.float32)
    out1 = jax.block_until_ready(trans_pooler_avg(x1, max_seq_tile=16))
    assert jnp.allclose(out1, jnp.mean(x1, axis=0), atol=1e-5, rtol=1e-5)

    # --- ragged S (S % ts != 0): masked last seq block (Pallas path)
    S2, B2, H2 = 20, 2, 128
    x2 = jax.random.normal(jax.random.PRNGKey(2), (S2, B2, H2), dtype=jnp.float32)
    out2 = jax.block_until_ready(trans_pooler_avg(x2, max_seq_tile=8))
    assert jnp.allclose(out2, jnp.mean(x2, axis=0), atol=1e-5, rtol=1e-5)

    # --- bf16: MXU ones-dot reduction + f32 scratch + masked ragged tail
    S3, B3, H3 = 40, 2, 128
    x3 = jax.random.normal(jax.random.PRNGKey(3), (S3, B3, H3)).astype(jnp.bfloat16)
    out3 = jax.block_until_ready(trans_pooler_avg(x3, max_seq_tile=16))
    ref3 = jnp.mean(x3.astype(jnp.float32), axis=0)
    assert out3.shape == (B3, H3)
    assert jnp.allclose(out3.astype(jnp.float32), ref3, atol=2e-2, rtol=2e-2)

    # --- default auto budget (no max_seq_tile): single full-seq block
    S4, B4, H4 = 128, 4, 256
    x4 = jax.random.normal(jax.random.PRNGKey(4), (S4, B4, H4), dtype=jnp.float32)
    out4 = jax.block_until_ready(trans_pooler(x4, method="avg"))
    assert jnp.allclose(out4, jnp.mean(x4, axis=0), atol=1e-5, rtol=1e-5)

    print("KERNEL_OK")
</pallas_src>

<mosaic_0001>
module attributes {stable_mosaic.version = 11 : i64} {
  func.func @_avg_kernel(%arg0: i32, %arg1: i32, %arg2: memref<16x256xf32, #tpu.memory_space<vmem>>, %arg3: memref<1x256xf32, #tpu.memory_space<vmem>>) attributes {dimension_semantics = [#tpu.dimension_semantics<parallel>, #tpu.dimension_semantics<arbitrary>], iteration_bounds = array<i64: 1, 4>, scalar_prefetch = 0 : i64, scratch_operands = 0 : i64, tpu.core_type = #tpu.core_type<tc>, window_params = [{transform_indices = @transform_0, window_bounds = array<i64: 16, 256>}, {transform_indices = @transform_1, window_bounds = array<i64: 1, 256>}]} {
    %c0_i32 = arith.constant 0 : i32
    %0 = arith.cmpi eq, %arg1, %c0_i32 : i32
    %1 = arith.extui %0 : i1 to i32
    %c0_i32_0 = arith.constant 0 : i32
    %2 = arith.cmpi ne, %1, %c0_i32_0 : i32
    scf.if %2 {
      %cst_7 = arith.constant 0.000000e+00 : f32
      %12 = vector.broadcast %cst_7 : f32 to vector<1x256xf32>
      %c0_8 = arith.constant 0 : index
      %c0_9 = arith.constant 0 : index
      %13 = vector.load %arg3[%c0_8, %c0_9] : memref<1x256xf32, #tpu.memory_space<vmem>>, vector<1x256xf32>
      tpu.vector_store %arg3[%c0_8, %c0_9], %12 {strides = array<i32>} : memref<1x256xf32, #tpu.memory_space<vmem>>, vector<1x256xf32>,
    } else {
    }
    %c0 = arith.constant 0 : index
    %c0_1 = arith.constant 0 : index
    %3 = vector.load %arg3[%c0, %c0_1] : memref<1x256xf32, #tpu.memory_space<vmem>>, vector<1x256xf32>
    %c0_2 = arith.constant 0 : index
    %c0_3 = arith.constant 0 : index
    %4 = vector.load %arg2[%c0_2, %c0_3] : memref<16x256xf32, #tpu.memory_space<vmem>>, vector<16x256xf32>
    %cst = arith.constant dense<0.000000e+00> : vector<256xf32>
    %5 = vector.multi_reduction <add>, %4, %cst [0] : vector<16x256xf32> to vector<256xf32>
    %6 = vector.shape_cast %5 : vector<256xf32> to vector<1x256xf32>
    %7 = arith.addf %3, %6 : vector<1x256xf32>
    %c0_4 = arith.constant 0 : index
    %c0_5 = arith.constant 0 : index
    %8 = vector.load %arg3[%c0_4, %c0_5] : memref<1x256xf32, #tpu.memory_space<vmem>>, vector<1x256xf32>
    tpu.vector_store %arg3[%c0_4, %c0_5], %7 {strides = array<i32>} : memref<1x256xf32, #tpu.memory_space<vmem>>, vector<1x256xf32>,
    %c3_i32 = arith.constant 3 : i32
    %9 = arith.cmpi eq, %arg1, %c3_i32 : i32
    %10 = arith.extui %9 : i1 to i32
    %c0_i32_6 = arith.constant 0 : i32
    %11 = arith.cmpi ne, %10, %c0_i32_6 : i32
    scf.if %11 {
      %c0_7 = arith.constant 0 : index
      %c0_8 = arith.constant 0 : index
      %12 = vector.load %arg3[%c0_7, %c0_8] : memref<1x256xf32, #tpu.memory_space<vmem>>, vector<1x256xf32>
      %cst_9 = arith.constant 1.562500e-02 : f32
      %13 = vector.broadcast %cst_9 : f32 to vector<1x256xf32>
      %14 = arith.mulf %12, %13 : vector<1x256xf32>
      %c0_10 = arith.constant 0 : index
      %c0_11 = arith.constant 0 : index
      %15 = vector.load %arg3[%c0_10, %c0_11] : memref<1x256xf32, #tpu.memory_space<vmem>>, vector<1x256xf32>
      tpu.vector_store %arg3[%c0_10, %c0_11], %14 {strides = array<i32>} : memref<1x256xf32, #tpu.memory_space<vmem>>, vector<1x256xf32>,
    } else {
    }
    return
  }
  func.func @transform_0(%arg0: i32, %arg1: i32) -> (i32, i32) {
    %c0_i32 = arith.constant 0 : i32
    return %arg1, %arg0 : i32, i32
  }
  func.func @transform_1(%arg0: i32, %arg1: i32) -> (i32, i32) {
    %c0_i32 = arith.constant 0 : i32
    %c0_i32_0 = arith.constant 0 : i32
    return %c0_i32, %arg0 : i32, i32
  }
}

</mosaic_0001>

<bundles_post_ra>
// kernel: tpu_custom_call.1
= control target key start
LH: loop header
LB: loop body
LE: loop exit
PB: predicated region body
PF: predicated region fallthrough
CT: control target
= control target key end

     0   :  { %6 = vsyncpa [#allocation3], 0  ;;  %s574_s0 = inlined_call_operand.hbm [shape: f32[64,256], index: 0, kind: input, shape index: {}]   ;;  %s575_s1 = inlined_call_operand.hbm [shape: f32[1,256], index: 1, kind: output, shape index: {}]  }
   0x1   :  { %8 = vsyncpa [#allocation3 + $0x1], 0 }
   0x2   :  { %9 = vsyncpa [#allocation4], 0  ;;  %s482_s6 = smov 0   ;;  %s484_s7 = smov 0  }
   0x3   :  { %s486_s8 = smov 0   ;;  %s488_s9 = smov 0  }
   0x4   :  { %s490_s10 = smov 0   ;;  %s492_s11 = smov 0  }
   0x5 LB: > { %s272_s12 = sadd.s32 4294967295, %s466_s11   ;;  %s24_s13 = sadd.s32 1, %s462_s10  ;;  %s466_s11 = sphi %s492_s11, %s15_s11   ;;  %s462_s10 = sphi %s490_s10, %s582_s10   ;;  %s458_s9 = sphi %s488_s9, %s581_s9   ;;  %s454_s8 = sphi %s486_s8, %s580_s8   ;;  %s450_s7 = sphi %s484_s7, %s579_s7   ;;  %s446_s6 = sphi %s482_s6, %s578_s6  }
   0x6   : > { %p25_p0 = scmp.ge.s32.totalorder %s24_s13, 4  ;;  %s36_s14 = sadd.s32 1, %s454_s8 }
   0x7   : > { %p43_p1 = scmp.ne.s32.totalorder %s454_s8, %s450_s7  ;;  %p44_p2 = scmp.eq.s32.totalorder %s466_s11, 0 }
   0x8   : > { %s584_s13 = smov (%p25_p0, %s24_s13), 0  ;;  %p49_p4 = scmp.ne.s32.totalorder %s450_s7, %s446_s6 }
   0x9   : > { %p518_p3 = por %p44_p2, %p43_p1  ;;  %s31_s16 = ssub.s32 %s462_s10, %s584_s13 }
   0xa   : > { %p50_p5 = scmp.eq.s32.totalorder %s272_s12, 0  ;;  %p34_p6 = scmp.eq.s32.totalorder %s31_s16, 0 }
   0xb   : > { %p299_p8 = scmp.lt.s32.totalorder %s466_s11, 4  ;;  %s99_s19 = sand.u32 1, %s454_s8  }
   0xc   : > { %p527_p7 = por %p50_p5, %p49_p4  ;;  %s288_s20 = sshll.u32 %s462_s10, 5 }
   0xd   : > { %s533_s18 = scalar_select %p34_p6, %s454_s8, %s36_s14  }
   0xe   : > { %s275_s21 = sshll.u32 %s99_s19, 5  ;;  %s111_s24 = scalar_lea.hbm %s574_s0, %s288_s20 }
   0xf   : > { %s112_s25 = sshll.u32 %s111_s24, 4  ;;  %s103_s26 = scalar_lea.vmem [#allocation2], %s275_s21  ;;  %s113_s25 = int_to_ptr.hbm [resolvable:$true] %s112_s25 }
  0x10   : > { %s114_s27 = sshll.u32 %s103_s26, 4  ;;  %p296_p9 = pnand %p299_p8, %p518_p3  ;;  %s115_s27 = int_to_ptr.vmem [resolvable:$true] %s114_s27 }
  0x11   : > { %p279_p10 = scmp.ge.s32.totalorder %s466_s11, 1  ;;  %p122_p11 = scmp.lt.s32.totalorder %s466_s11, 5 }
  0x12   : > { %s100_s28 = scalar_lea.sflag [#allocation3], %s99_s19  ;;  %s468_s29 = smov 256  }
  0x13   : > { %s469_s30 = smov 16   ;;  %p123_p12 = pnand %p279_p10, %p122_p11 }
  0x14   : > { %298 = dma.hbm_to_vmem [thread:$0]  (!%p296_p9), %s113_s25, 512, %s115_s27, %s100_s28, %s468_s29, %s468_s29, %s469_s30  }
  0x15   : > { %126 = sbr.rel (%p123_p12) target bundleno = 76 (0x4c), region = 24  ;;  %s128_s2 = sand.u32 (!%p123_p12), 1, %s450_s7  }
  0x16   : > { %s280_s3 = sshll.u32 (!%p123_p12), %s128_s2, 5  ;;  %s129_s4 = scalar_lea.sflag (!%p123_p12), [#allocation3], %s128_s2 }
  0x17   : > { %s132_s5 = scalar_lea.vmem (!%p123_p12), [#allocation2], %s280_s3 }
  0x1a   : > { %437 = dma.done.wait (%p527_p7), %s129_s4, 512  }
  0x1b   : > { %439 = vsyncadd (%p527_p7), %s129_s4, 4294966784  ;;  %p281_p13 = scmp.ne.s32.totalorder %s458_s9, 0 }
  0x1d   : > { %153 = sbr.rel (%p281_p13) target bundleno = 38 (0x26), region = 32 }
  0x22   : > { %v154_v0 = vlaneseq  ;;  %v470_v1 = vmov 0.0  }
  0x24   : > { %vm156_vm0 = vcmp.lt.s32.totalorder %v154_v0, 256 }
  0x25   : > { %158 = vst.msk [vmem:[#allocation5] sm:$0x3] %vm156_vm0, %v470_v1 }
  0x26 PF: > { %v160_v2 = vld [vmem:[%s132_s5] sm:$0xff]  ;;  %v161_v3 = vld [vmem:[%s132_s5 + $0x8] sm:$0xff]  ;;  %v162_v4 = vld [vmem:[%s132_s5 + $0x10] sm:$0xff]  ;;  %v185_v20 = vlaneseq  ;;  %vm181_vm1 = vcmask 1040384   ;;  %p282_p0 = scmp.ne.s32.totalorder %s458_s9, 3 }
  0x27   : > { %v163_v5 = vld [vmem:[%s132_s5 + $0x18] sm:$0xff]  ;;  %v164_v6 = vadd.f32 %v162_v4, %v160_v2 }
  0x28   : > { %v171_v7 = vadd.f32 %v163_v5, %v161_v3  ;;  %vm187_vm2 = vcmp.lt.s32.totalorder %v185_v20, 256 }
  0x29   : > { %v165_v8 = vrot.slane %v164_v6, 4 }
  0x2a   : > { %v172_v9 = vrot.slane %v171_v7, 4 }
  0x2b   : > { %v166_v10 = vadd.f32 %v165_v8, %v164_v6 }
  0x2c   : > { %v173_v11 = vadd.f32 %v172_v9, %v171_v7  ;;  %v159_v21 = vld [vmem:[#allocation5] sm:$0x3] }
  0x2d   : > { %v167_v12 = vrot.slane %v166_v10, 2 }
  0x2e   : > { %v174_v13 = vrot.slane %v173_v11, 2 }
  0x2f   : > { %v168_v14 = vadd.f32 %v167_v12, %v166_v10 }
  0x30   : > { %v175_v15 = vadd.f32 %v174_v13, %v173_v11 }
  0x31   : > { %v169_v16 = vrot.slane %v168_v14, 1 }
  0x32   : > { %v176_v17 = vrot.slane %v175_v15, 1 }
  0x33   : > { %v170_v18 = vadd.f32 %v169_v16, %v168_v14 }
  0x34   : > { %v177_v19 = vadd.f32 %v176_v17, %v175_v15 }
  0x36   : > { %v180_v22 = vrot.slane %v177_v19, 7 }
  0x37   : > { %193 = sbr.rel (%p282_p0) target bundleno = 70 (0x46), region = 36 }
  0x38   : > { %v182_v23 = vsel %vm181_vm1, %v170_v18, %v180_v22 }
  0x39   : > { %v184_v24 = vadd.f32 %v182_v23, %v159_v21 }
  0x3b   : > { %189 = vst.msk [vmem:[#allocation5] sm:$0x3] %vm187_vm2, %v184_v24 }
  0x42   : > { %v194_v25 = vld [vmem:[#allocation5] sm:$0x3] }
  0x43   : > { %v195_v26 = vmul.f32 0.015625, %v194_v25 }
  0x45   : > { %196 = vst.msk [vmem:[#allocation5] sm:$0x3] %vm187_vm2, %v195_v26 }
  0x46 PF: > { %p300_p1 = scmp.eq.s32.totalorder %s272_s12, 3  ;;  %s207_s15 = sshll.u32 %s575_s1, 4  ;;  %s208_s15 = int_to_ptr.hbm [resolvable:$true] %s207_s15 }
  0x47   : > { %s471_s16 = smov [#allocation5]  }
  0x48   : > { %s205_s17 = sshll.u32 %s471_s16, 4  ;;  %s206_s17 = int_to_ptr.vmem [resolvable:$true] %s205_s17 }
  0x49   : > { %292 = dma.vmem_to_hbm [thread:$0]  (%p300_p1), %s206_s17, 32, %s208_s15, [#allocation4]  }
  0x4a   : > { %441 = dma.done.wait (%p300_p1), [#allocation4], 32  }
  0x4b   : > { %443 = vsyncadd (%p300_p1), [#allocation4], 4294967264 }
  0x4c PF: > { %s15_s11 = sadd.s32 1, %s466_s11   ;;  %s578_s6 = smov %s450_s7 }
  0x4d   : > { %p12_p2 = scmp.ge.s32.totalorder %s15_s11, 6   ;;  %s579_s7 = smov %s454_s8 }
  0x4e   : > { %s580_s8 = smov %s533_s18  ;;  %s581_s9 = smov %s462_s10 }
  0x4f   : > { %s582_s10 = smov %s584_s13  ;;  %14 = sbr.rel (!%p12_p2) target bundleno = 5 (0x5), region = 70 }
  0x54   :  { %221 = vsyncpa [#allocation3], 1 }
  0x55   :  { %223 = vsyncpa [#allocation3 + $0x1], 1 }
  0x56   :  { %224 = vsyncpa [#allocation4], 1 }
  0x57   :  { %226 = vsyncpa [#allocation4 + $0x1], 1 }

</bundles_post_ra>
